<compile_context>
chip_gen: v6e
topology: v6e:2x2x1
jax: 0.10.0
libtpu: 0.0.40
codegen_flags: <defaults>
</compile_context>

<pallas_src>
import math
import functools

import jax
import jax.numpy as jnp
from jax.experimental import pallas as pl
from jax.experimental.pallas import tpu as pltpu


# ----------------------------------------------------------------------------- kernel
def _fused_kernel(x_ref, xt_ref, w_ref, b_ref, g_ref, be_ref, mbias_ref,
                  out_ref, sim_ref, *, alpha, n_cutout, n_batch):
    """Fused conv+BN+LeakyReLU embedding + masked spatial attention (single grid step).

    x_ref / xt_ref : (N, F)    rows = n_batch*n_cutout, F = n_channel*n_pts
    w_ref          : (F, 128)
    b/g/be_ref     : (1, 128)
    mbias_ref      : (C, C)    additive mask bias, 0 where allowed, -1e10 where masked
    out_ref        : (N, F)
    sim_ref        : (N, C)
    """
    w = w_ref[...]
    bias = b_ref[...]
    gamma = g_ref[...]
    beta = be_ref[...]

    def embed(rows):
        # Conv1d(kernel_size=n_pts, padding=0) over flattened features == dense GEMM.
        h = jnp.dot(rows, w, preferred_element_type=jnp.float32) + bias
        # BatchNorm1d, training mode: batch stats over ALL rows, biased var, eps=1e-5.
        # Single pass: var = E[h^2] - E[h]^2.
        mean = jnp.mean(h, axis=0, keepdims=True)
        mean_sq = jnp.mean(h * h, axis=0, keepdims=True)
        var = jnp.maximum(mean_sq - mean * mean, 0.0)
        h = (h - mean) * jax.lax.rsqrt(var + 1e-5)
        h = h * gamma + beta
        # LeakyReLU(negative_slope=0.1)
        return jnp.where(h >= 0.0, h, 0.1 * h)

    # Separate BN statistics for x and x_template (matches the two self.conv() calls),
    # each computed exactly once (single grid step -> no redundant recompute).
    embx = embed(x_ref[...])    # (N, 128)
    embt = embed(xt_ref[...])   # (N, 128)

    x_all = x_ref[...]          # (N, F)
    xt_all = xt_ref[...]        # (N, F)
    mbias = mbias_ref[...]      # (C, C)

    C = n_cutout
    for b in range(n_batch):    # static unroll; n_batch is small
        lo, hi = b * C, (b + 1) * C
        ex = embx[lo:hi, :]     # (C, 128)
        et = embt[lo:hi, :]     # (C, 128)

        # sim = emb_x @ emb_temp^T  (contract over the 128-dim embedding).
        s = pl.dot(ex, et, trans_b=True) + mbias             # (C, C)

        # Masked softmax over the last axis.  exp(-1e10 + small) underflows to exactly
        # 0 in f32, so the reference's post-exp `* mask` is redundant and dropped.
        mx = jnp.max(s, axis=-1, keepdims=True)
        e = jnp.exp(s - mx)
        sim = e / jnp.sum(e, axis=-1, keepdims=True)
        sim_ref[lo:hi, :] = sim

        # Weighted aggregation of the template cutouts + residual blend.
        agg = jnp.dot(sim, xt_all[lo:hi, :], preferred_element_type=jnp.float32)
        out_ref[lo:hi, :] = alpha * x_all[lo:hi, :] + (1.0 - alpha) * agg


# ----------------------------------------------------------------------------- wrappers
def make_neighbor_mask(n_cutout, window_size):
    # _generate_neighbor_mask: clamped sliding-window column indices reduce to
    # mask[i, j] = 1.0 iff |i - j| <= window_size // 2
    hw = int(window_size / 2)
    idx = jnp.arange(n_cutout)
    return (jnp.abs(idx[:, None] - idx[None, :]) <= hw).astype(jnp.float32)


def init_params(key, n_pts, n_channel, emb_dim=128):
    k_w, k_b = jax.random.split(key)
    fan_in = n_channel * n_pts
    # kaiming_normal_(a=0.1, nonlinearity='leaky_relu')
    gain = math.sqrt(2.0 / (1.0 + 0.1 ** 2))
    std = gain / math.sqrt(fan_in)
    w = jax.random.normal(k_w, (emb_dim, n_channel, n_pts), jnp.float32) * std
    # Conv1d default bias init: U(-1/sqrt(fan_in), 1/sqrt(fan_in))
    bound = 1.0 / math.sqrt(fan_in)
    b = jax.random.uniform(k_b, (emb_dim,), jnp.float32, -bound, bound)
    gamma = jnp.ones((emb_dim,), jnp.float32)   # BN weight init 1
    beta = jnp.zeros((emb_dim,), jnp.float32)   # BN bias init 0
    return {"w": w, "b": b, "gamma": gamma, "beta": beta}


def spatial_attention_forward(x, x_template, params, alpha=0.5, window_size=7):
    n_batch, n_cutout, n_channel, n_pts = x.shape
    feat = n_channel * n_pts
    emb_dim = params["w"].shape[0]
    n_rows = n_batch * n_cutout

    # Precompute additive mask bias once in the wrapper: 0 allowed, -1e10 masked.
    mask = make_neighbor_mask(n_cutout, window_size)
    mask_bias = (-1.0e10) * (1.0 - mask)

    # conv weight (128, n_channel, n_pts) -> dense (F, 128); scalars to (1, 128) rows.
    w2d = params["w"].reshape(emb_dim, feat).T
    b2d = params["b"].reshape(1, emb_dim)
    g2d = params["gamma"].reshape(1, emb_dim)
    be2d = params["beta"].reshape(1, emb_dim)

    x_rows = x.reshape(n_rows, feat)
    xt_rows = x_template.reshape(n_rows, feat)

    kernel = functools.partial(_fused_kernel, alpha=float(alpha),
                               n_cutout=n_cutout, n_batch=n_batch)

    # Explicit VMEM budget from the actual resident buffers (inputs + outputs +
    # the two (N,128) embedding temporaries), with generous headroom.
    vmem_bytes = 4 * (2 * n_rows * feat                      # x, xt rows
                      + feat * emb_dim + 3 * emb_dim         # weights / BN params
                      + n_cutout * n_cutout                  # mask bias
                      + n_rows * feat + n_rows * n_cutout    # outputs
                      + 4 * n_rows * emb_dim)                # embeddings + temps
    vmem_limit = int(min(max(8 * vmem_bytes, 16 << 20), 64 << 20))

    out_flat, sim_flat = pl.pallas_call(
        kernel,
        out_shape=(jax.ShapeDtypeStruct((n_rows, feat), jnp.float32),
                   jax.ShapeDtypeStruct((n_rows, n_cutout), jnp.float32)),
        grid=(1,),                                           # single step: embed once
        in_specs=[
            pl.BlockSpec((n_rows, feat), lambda i: (0, 0)),        # x rows
            pl.BlockSpec((n_rows, feat), lambda i: (0, 0)),        # template rows
            pl.BlockSpec((feat, emb_dim), lambda i: (0, 0)),       # conv weight
            pl.BlockSpec((1, emb_dim), lambda i: (0, 0)),          # conv bias
            pl.BlockSpec((1, emb_dim), lambda i: (0, 0)),          # BN gamma
            pl.BlockSpec((1, emb_dim), lambda i: (0, 0)),          # BN beta
            pl.BlockSpec((n_cutout, n_cutout), lambda i: (0, 0)),  # additive mask bias
        ],
        out_specs=(pl.BlockSpec((n_rows, feat), lambda i: (0, 0)),
                   pl.BlockSpec((n_rows, n_cutout), lambda i: (0, 0))),
        compiler_params=pltpu.CompilerParams(
            dimension_semantics=("arbitrary",),
            vmem_limit_bytes=vmem_limit),
    )(x_rows, xt_rows, w2d, b2d, g2d, be2d, mask_bias)

    out = out_flat.reshape(n_batch, n_cutout, n_channel, n_pts)
    sim = sim_flat.reshape(n_batch, n_cutout, n_cutout)
    return out, sim


# ----------------------------------------------------------------------------- main
if __name__ == "__main__":
    n_batch, n_cutout, n_channel, n_pts = 2, 16, 4, 16
    alpha, window_size = 0.5, 7

    key = jax.random.PRNGKey(0)
    k_param, k_x, k_xt = jax.random.split(key, 3)

    params = init_params(k_param, n_pts=n_pts, n_channel=n_channel)
    x = jax.random.normal(k_x, (n_batch, n_cutout, n_channel, n_pts), jnp.float32)
    x_template = jax.random.normal(k_xt, (n_batch, n_cutout, n_channel, n_pts), jnp.float32)

    out, sim = spatial_attention_forward(x, x_template, params,
                                         alpha=alpha, window_size=window_size)
    out, sim = jax.block_until_ready((out, sim))

    assert out.shape == (n_batch, n_cutout, n_channel, n_pts)
    assert sim.shape == (n_batch, n_cutout, n_cutout)
    assert bool(jnp.all(jnp.isfinite(out))) and bool(jnp.all(jnp.isfinite(sim)))
    # attention rows must (exactly-normalized divide) sum to ~1
    assert bool(jnp.all(jnp.abs(jnp.sum(sim, axis=-1) - 1.0) < 1e-5))
    print("KERNEL_OK")
</pallas_src>

<mosaic_0001>
module attributes {stable_mosaic.version = 11 : i64} {
  func.func @_fused_kernel(%arg0: i32, %arg1: memref<32x64xf32, #tpu.memory_space<vmem>>, %arg2: memref<32x64xf32, #tpu.memory_space<vmem>>, %arg3: memref<64x128xf32, #tpu.memory_space<vmem>>, %arg4: memref<1x128xf32, #tpu.memory_space<vmem>>, %arg5: memref<1x128xf32, #tpu.memory_space<vmem>>, %arg6: memref<1x128xf32, #tpu.memory_space<vmem>>, %arg7: memref<16x16xf32, #tpu.memory_space<vmem>>, %arg8: memref<32x64xf32, #tpu.memory_space<vmem>>, %arg9: memref<32x16xf32, #tpu.memory_space<vmem>>) attributes {dimension_semantics = [#tpu.dimension_semantics<arbitrary>], iteration_bounds = array<i64: 1>, scalar_prefetch = 0 : i64, scratch_operands = 0 : i64, tpu.core_type = #tpu.core_type<tc>, window_params = [{pipeline_mode = #tpu.pipeline_mode<synchronous>, transform_indices = @transform_0, window_bounds = array<i64: 32, 64>}, {pipeline_mode = #tpu.pipeline_mode<synchronous>, transform_indices = @transform_1, window_bounds = array<i64: 32, 64>}, {pipeline_mode = #tpu.pipeline_mode<synchronous>, transform_indices = @transform_2, window_bounds = array<i64: 64, 128>}, {pipeline_mode = #tpu.pipeline_mode<synchronous>, transform_indices = @transform_3, window_bounds = array<i64: 1, 128>}, {pipeline_mode = #tpu.pipeline_mode<synchronous>, transform_indices = @transform_4, window_bounds = array<i64: 1, 128>}, {pipeline_mode = #tpu.pipeline_mode<synchronous>, transform_indices = @transform_5, window_bounds = array<i64: 1, 128>}, {pipeline_mode = #tpu.pipeline_mode<synchronous>, transform_indices = @transform_6, window_bounds = array<i64: 16, 16>}, {pipeline_mode = #tpu.pipeline_mode<synchronous>, transform_indices = @transform_7, window_bounds = array<i64: 32, 64>}, {pipeline_mode = #tpu.pipeline_mode<synchronous>, transform_indices = @transform_8, window_bounds = array<i64: 32, 16>}]} {
    %c0 = arith.constant 0 : index
    %c0_0 = arith.constant 0 : index
    %0 = vector.load %arg3[%c0, %c0_0] : memref<64x128xf32, #tpu.memory_space<vmem>>, vector<64x128xf32>
    %c0_1 = arith.constant 0 : index
    %c0_2 = arith.constant 0 : index
    %1 = vector.load %arg4[%c0_1, %c0_2] : memref<1x128xf32, #tpu.memory_space<vmem>>, vector<1x128xf32>
    %c0_3 = arith.constant 0 : index
    %c0_4 = arith.constant 0 : index
    %2 = vector.load %arg5[%c0_3, %c0_4] : memref<1x128xf32, #tpu.memory_space<vmem>>, vector<1x128xf32>
    %c0_5 = arith.constant 0 : index
    %c0_6 = arith.constant 0 : index
    %3 = vector.load %arg6[%c0_5, %c0_6] : memref<1x128xf32, #tpu.memory_space<vmem>>, vector<1x128xf32>
    %c0_7 = arith.constant 0 : index
    %c0_8 = arith.constant 0 : index
    %4 = vector.load %arg1[%c0_7, %c0_8] : memref<32x64xf32, #tpu.memory_space<vmem>>, vector<32x64xf32>
    %cst = arith.constant dense<0.000000e+00> : vector<32x128xf32>
    %5 = tpu.matmul %4, %0, %cst {dimension_numbers = #tpu.dot_dimension_numbers<[1], [0], [0], [1], [0, 0, 1, 1], [], []>} : vector<32x64xf32>, vector<64x128xf32>, vector<32x128xf32> -> vector<32x128xf32>
    %6 = vector.broadcast %1 : vector<1x128xf32> to vector<32x128xf32>
    %7 = arith.addf %5, %6 : vector<32x128xf32>
    %cst_9 = arith.constant dense<0.000000e+00> : vector<128xf32>
    %8 = vector.multi_reduction <add>, %7, %cst_9 [0] : vector<32x128xf32> to vector<128xf32>
    %9 = vector.shape_cast %8 : vector<128xf32> to vector<1x128xf32>
    %cst_10 = arith.constant 3.200000e+01 : f32
    %10 = vector.broadcast %cst_10 : f32 to vector<1x128xf32>
    %11 = arith.divf %9, %10 : vector<1x128xf32>
    %12 = arith.mulf %7, %7 : vector<32x128xf32>
    %cst_11 = arith.constant dense<0.000000e+00> : vector<128xf32>
    %13 = vector.multi_reduction <add>, %12, %cst_11 [0] : vector<32x128xf32> to vector<128xf32>
    %14 = vector.shape_cast %13 : vector<128xf32> to vector<1x128xf32>
    %cst_12 = arith.constant 3.200000e+01 : f32
    %15 = vector.broadcast %cst_12 : f32 to vector<1x128xf32>
    %16 = arith.divf %14, %15 : vector<1x128xf32>
    %17 = arith.mulf %11, %11 : vector<1x128xf32>
    %18 = arith.subf %16, %17 : vector<1x128xf32>
    %cst_13 = arith.constant 0.000000e+00 : f32
    %19 = vector.broadcast %cst_13 : f32 to vector<1x128xf32>
    %20 = arith.maximumf %18, %19 : vector<1x128xf32>
    %21 = vector.broadcast %11 : vector<1x128xf32> to vector<32x128xf32>
    %22 = arith.subf %7, %21 : vector<32x128xf32>
    %cst_14 = arith.constant 9.99999974E-6 : f32
    %23 = vector.broadcast %cst_14 : f32 to vector<1x128xf32>
    %24 = arith.addf %20, %23 : vector<1x128xf32>
    %25 = math.rsqrt %24 : vector<1x128xf32>
    %26 = vector.broadcast %25 : vector<1x128xf32> to vector<32x128xf32>
    %27 = arith.mulf %22, %26 : vector<32x128xf32>
    %28 = vector.broadcast %2 : vector<1x128xf32> to vector<32x128xf32>
    %29 = arith.mulf %27, %28 : vector<32x128xf32>
    %30 = vector.broadcast %3 : vector<1x128xf32> to vector<32x128xf32>
    %31 = arith.addf %29, %30 : vector<32x128xf32>
    %cst_15 = arith.constant 0.000000e+00 : f32
    %32 = vector.broadcast %cst_15 : f32 to vector<32x128xf32>
    %33 = arith.cmpf oge, %31, %32 : vector<32x128xf32>
    %cst_16 = arith.constant 1.000000e-01 : f32
    %34 = vector.broadcast %cst_16 : f32 to vector<32x128xf32>
    %35 = arith.mulf %34, %31 : vector<32x128xf32>
    %36 = arith.select %33, %31, %35 : vector<32x128xi1>, vector<32x128xf32>
    %c0_17 = arith.constant 0 : index
    %c0_18 = arith.constant 0 : index
    %37 = vector.load %arg2[%c0_17, %c0_18] : memref<32x64xf32, #tpu.memory_space<vmem>>, vector<32x64xf32>
    %cst_19 = arith.constant dense<0.000000e+00> : vector<32x128xf32>
    %38 = tpu.matmul %37, %0, %cst_19 {dimension_numbers = #tpu.dot_dimension_numbers<[1], [0], [0], [1], [0, 0, 1, 1], [], []>} : vector<32x64xf32>, vector<64x128xf32>, vector<32x128xf32> -> vector<32x128xf32>
    %39 = vector.broadcast %1 : vector<1x128xf32> to vector<32x128xf32>
    %40 = arith.addf %38, %39 : vector<32x128xf32>
    %cst_20 = arith.constant dense<0.000000e+00> : vector<128xf32>
    %41 = vector.multi_reduction <add>, %40, %cst_20 [0] : vector<32x128xf32> to vector<128xf32>
    %42 = vector.shape_cast %41 : vector<128xf32> to vector<1x128xf32>
    %cst_21 = arith.constant 3.200000e+01 : f32
    %43 = vector.broadcast %cst_21 : f32 to vector<1x128xf32>
    %44 = arith.divf %42, %43 : vector<1x128xf32>
    %45 = arith.mulf %40, %40 : vector<32x128xf32>
    %cst_22 = arith.constant dense<0.000000e+00> : vector<128xf32>
    %46 = vector.multi_reduction <add>, %45, %cst_22 [0] : vector<32x128xf32> to vector<128xf32>
    %47 = vector.shape_cast %46 : vector<128xf32> to vector<1x128xf32>
    %cst_23 = arith.constant 3.200000e+01 : f32
    %48 = vector.broadcast %cst_23 : f32 to vector<1x128xf32>
    %49 = arith.divf %47, %48 : vector<1x128xf32>
    %50 = arith.mulf %44, %44 : vector<1x128xf32>
    %51 = arith.subf %49, %50 : vector<1x128xf32>
    %cst_24 = arith.constant 0.000000e+00 : f32
    %52 = vector.broadcast %cst_24 : f32 to vector<1x128xf32>
    %53 = arith.maximumf %51, %52 : vector<1x128xf32>
    %54 = vector.broadcast %44 : vector<1x128xf32> to vector<32x128xf32>
    %55 = arith.subf %40, %54 : vector<32x128xf32>
    %cst_25 = arith.constant 9.99999974E-6 : f32
    %56 = vector.broadcast %cst_25 : f32 to vector<1x128xf32>
    %57 = arith.addf %53, %56 : vector<1x128xf32>
    %58 = math.rsqrt %57 : vector<1x128xf32>
    %59 = vector.broadcast %58 : vector<1x128xf32> to vector<32x128xf32>
    %60 = arith.mulf %55, %59 : vector<32x128xf32>
    %61 = vector.broadcast %2 : vector<1x128xf32> to vector<32x128xf32>
    %62 = arith.mulf %60, %61 : vector<32x128xf32>
    %63 = vector.broadcast %3 : vector<1x128xf32> to vector<32x128xf32>
    %64 = arith.addf %62, %63 : vector<32x128xf32>
    %cst_26 = arith.constant 0.000000e+00 : f32
    %65 = vector.broadcast %cst_26 : f32 to vector<32x128xf32>
    %66 = arith.cmpf oge, %64, %65 : vector<32x128xf32>
    %cst_27 = arith.constant 1.000000e-01 : f32
    %67 = vector.broadcast %cst_27 : f32 to vector<32x128xf32>
    %68 = arith.mulf %67, %64 : vector<32x128xf32>
    %69 = arith.select %66, %64, %68 : vector<32x128xi1>, vector<32x128xf32>
    %c0_28 = arith.constant 0 : index
    %c0_29 = arith.constant 0 : index
    %70 = vector.load %arg1[%c0_28, %c0_29] : memref<32x64xf32, #tpu.memory_space<vmem>>, vector<32x64xf32>
    %c0_30 = arith.constant 0 : index
    %c0_31 = arith.constant 0 : index
    %71 = vector.load %arg2[%c0_30, %c0_31] : memref<32x64xf32, #tpu.memory_space<vmem>>, vector<32x64xf32>
    %c0_32 = arith.constant 0 : index
    %c0_33 = arith.constant 0 : index
    %72 = vector.load %arg7[%c0_32, %c0_33] : memref<16x16xf32, #tpu.memory_space<vmem>>, vector<16x16xf32>
    %73 = vector.extract_strided_slice %36 {offsets = [0, 0], sizes = [16, 128], strides = [1, 1]} : vector<32x128xf32> to vector<16x128xf32>
    %74 = vector.extract_strided_slice %69 {offsets = [0, 0], sizes = [16, 128], strides = [1, 1]} : vector<32x128xf32> to vector<16x128xf32>
    %cst_34 = arith.constant dense<0.000000e+00> : vector<16x16xf32>
    %75 = tpu.matmul %73, %74, %cst_34 {dimension_numbers = #tpu.dot_dimension_numbers<[1], [1], [0], [0], [0, 0, 1, 0], [], []>} : vector<16x128xf32>, vector<16x128xf32>, vector<16x16xf32> -> vector<16x16xf32>
    %76 = arith.addf %75, %72 : vector<16x16xf32>
    %cst_35 = arith.constant dense<0xFF800000> : vector<16xf32>
    %77 = vector.multi_reduction <maximumf>, %76, %cst_35 [1] : vector<16x16xf32> to vector<16xf32>
    %78 = vector.shape_cast %77 : vector<16xf32> to vector<16x1xf32>
    %79 = vector.broadcast %78 : vector<16x1xf32> to vector<16x16xf32>
    %80 = arith.subf %76, %79 : vector<16x16xf32>
    %81 = math.exp %80 : vector<16x16xf32>
    %cst_36 = arith.constant dense<0.000000e+00> : vector<16xf32>
    %82 = vector.multi_reduction <add>, %81, %cst_36 [1] : vector<16x16xf32> to vector<16xf32>
    %83 = vector.shape_cast %82 : vector<16xf32> to vector<16x1xf32>
    %84 = vector.broadcast %83 : vector<16x1xf32> to vector<16x16xf32>
    %85 = arith.divf %81, %84 : vector<16x16xf32>
    %c0_37 = arith.constant 0 : index
    %c0_38 = arith.constant 0 : index
    %86 = vector.load %arg9[%c0_37, %c0_38] : memref<32x16xf32, #tpu.memory_space<vmem>>, vector<16x16xf32>
    tpu.vector_store %arg9[%c0_37, %c0_38], %85 {strides = array<i32>} : memref<32x16xf32, #tpu.memory_space<vmem>>, vector<16x16xf32>,
    %87 = vector.extract_strided_slice %71 {offsets = [0, 0], sizes = [16, 64], strides = [1, 1]} : vector<32x64xf32> to vector<16x64xf32>
    %cst_39 = arith.constant dense<0.000000e+00> : vector<16x64xf32>
    %88 = tpu.matmul %85, %87, %cst_39 {dimension_numbers = #tpu.dot_dimension_numbers<[1], [0], [0], [1], [0, 0, 1, 1], [], []>} : vector<16x16xf32>, vector<16x64xf32>, vector<16x64xf32> -> vector<16x64xf32>
    %89 = vector.extract_strided_slice %70 {offsets = [0, 0], sizes = [16, 64], strides = [1, 1]} : vector<32x64xf32> to vector<16x64xf32>
    %cst_40 = arith.constant 5.000000e-01 : f32
    %90 = vector.broadcast %cst_40 : f32 to vector<16x64xf32>
    %91 = arith.mulf %90, %89 : vector<16x64xf32>
    %cst_41 = arith.constant 5.000000e-01 : f32
    %92 = vector.broadcast %cst_41 : f32 to vector<16x64xf32>
    %93 = arith.mulf %92, %88 : vector<16x64xf32>
    %94 = arith.addf %91, %93 : vector<16x64xf32>
    %c0_42 = arith.constant 0 : index
    %c0_43 = arith.constant 0 : index
    %95 = vector.load %arg8[%c0_42, %c0_43] : memref<32x64xf32, #tpu.memory_space<vmem>>, vector<16x64xf32>
    tpu.vector_store %arg8[%c0_42, %c0_43], %94 {strides = array<i32>} : memref<32x64xf32, #tpu.memory_space<vmem>>, vector<16x64xf32>,
    %96 = vector.extract_strided_slice %36 {offsets = [16, 0], sizes = [16, 128], strides = [1, 1]} : vector<32x128xf32> to vector<16x128xf32>
    %97 = vector.extract_strided_slice %69 {offsets = [16, 0], sizes = [16, 128], strides = [1, 1]} : vector<32x128xf32> to vector<16x128xf32>
    %cst_44 = arith.constant dense<0.000000e+00> : vector<16x16xf32>
    %98 = tpu.matmul %96, %97, %cst_44 {dimension_numbers = #tpu.dot_dimension_numbers<[1], [1], [0], [0], [0, 0, 1, 0], [], []>} : vector<16x128xf32>, vector<16x128xf32>, vector<16x16xf32> -> vector<16x16xf32>
    %99 = arith.addf %98, %72 : vector<16x16xf32>
    %cst_45 = arith.constant dense<0xFF800000> : vector<16xf32>
    %100 = vector.multi_reduction <maximumf>, %99, %cst_45 [1] : vector<16x16xf32> to vector<16xf32>
    %101 = vector.shape_cast %100 : vector<16xf32> to vector<16x1xf32>
    %102 = vector.broadcast %101 : vector<16x1xf32> to vector<16x16xf32>
    %103 = arith.subf %99, %102 : vector<16x16xf32>
    %104 = math.exp %103 : vector<16x16xf32>
    %cst_46 = arith.constant dense<0.000000e+00> : vector<16xf32>
    %105 = vector.multi_reduction <add>, %104, %cst_46 [1] : vector<16x16xf32> to vector<16xf32>
    %106 = vector.shape_cast %105 : vector<16xf32> to vector<16x1xf32>
    %107 = vector.broadcast %106 : vector<16x1xf32> to vector<16x16xf32>
    %108 = arith.divf %104, %107 : vector<16x16xf32>
    %c16 = arith.constant 16 : index
    %c0_47 = arith.constant 0 : index
    %109 = vector.load %arg9[%c16, %c0_47] : memref<32x16xf32, #tpu.memory_space<vmem>>, vector<16x16xf32>
    tpu.vector_store %arg9[%c16, %c0_47], %108 {strides = array<i32>} : memref<32x16xf32, #tpu.memory_space<vmem>>, vector<16x16xf32>,
    %110 = vector.extract_strided_slice %71 {offsets = [16, 0], sizes = [16, 64], strides = [1, 1]} : vector<32x64xf32> to vector<16x64xf32>
    %cst_48 = arith.constant dense<0.000000e+00> : vector<16x64xf32>
    %111 = tpu.matmul %108, %110, %cst_48 {dimension_numbers = #tpu.dot_dimension_numbers<[1], [0], [0], [1], [0, 0, 1, 1], [], []>} : vector<16x16xf32>, vector<16x64xf32>, vector<16x64xf32> -> vector<16x64xf32>
    %112 = vector.extract_strided_slice %70 {offsets = [16, 0], sizes = [16, 64], strides = [1, 1]} : vector<32x64xf32> to vector<16x64xf32>
    %cst_49 = arith.constant 5.000000e-01 : f32
    %113 = vector.broadcast %cst_49 : f32 to vector<16x64xf32>
    %114 = arith.mulf %113, %112 : vector<16x64xf32>
    %cst_50 = arith.constant 5.000000e-01 : f32
    %115 = vector.broadcast %cst_50 : f32 to vector<16x64xf32>
    %116 = arith.mulf %115, %111 : vector<16x64xf32>
    %117 = arith.addf %114, %116 : vector<16x64xf32>
    %c16_51 = arith.constant 16 : index
    %c0_52 = arith.constant 0 : index
    %118 = vector.load %arg8[%c16_51, %c0_52] : memref<32x64xf32, #tpu.memory_space<vmem>>, vector<16x64xf32>
    tpu.vector_store %arg8[%c16_51, %c0_52], %117 {strides = array<i32>} : memref<32x64xf32, #tpu.memory_space<vmem>>, vector<16x64xf32>,
    return
  }
  func.func @transform_0(%arg0: i32) -> (i32, i32) {
    %c0_i32 = arith.constant 0 : i32
    %c0_i32_0 = arith.constant 0 : i32
    %c0_i32_1 = arith.constant 0 : i32
    return %c0_i32, %c0_i32_0 : i32, i32
  }
  func.func @transform_1(%arg0: i32) -> (i32, i32) {
    %c0_i32 = arith.constant 0 : i32
    %c0_i32_0 = arith.constant 0 : i32
    %c0_i32_1 = arith.constant 0 : i32
    return %c0_i32, %c0_i32_0 : i32, i32
  }
  func.func @transform_2(%arg0: i32) -> (i32, i32) {
    %c0_i32 = arith.constant 0 : i32
    %c0_i32_0 = arith.constant 0 : i32
    %c0_i32_1 = arith.constant 0 : i32
    return %c0_i32, %c0_i32_0 : i32, i32
  }
  func.func @transform_3(%arg0: i32) -> (i32, i32) {
    %c0_i32 = arith.constant 0 : i32
    %c0_i32_0 = arith.constant 0 : i32
    %c0_i32_1 = arith.constant 0 : i32
    return %c0_i32, %c0_i32_0 : i32, i32
  }
  func.func @transform_4(%arg0: i32) -> (i32, i32) {
    %c0_i32 = arith.constant 0 : i32
    %c0_i32_0 = arith.constant 0 : i32
    %c0_i32_1 = arith.constant 0 : i32
    return %c0_i32, %c0_i32_0 : i32, i32
  }
  func.func @transform_5(%arg0: i32) -> (i32, i32) {
    %c0_i32 = arith.constant 0 : i32
    %c0_i32_0 = arith.constant 0 : i32
    %c0_i32_1 = arith.constant 0 : i32
    return %c0_i32, %c0_i32_0 : i32, i32
  }
  func.func @transform_6(%arg0: i32) -> (i32, i32) {
    %c0_i32 = arith.constant 0 : i32
    %c0_i32_0 = arith.constant 0 : i32
    %c0_i32_1 = arith.constant 0 : i32
    return %c0_i32, %c0_i32_0 : i32, i32
  }
  func.func @transform_7(%arg0: i32) -> (i32, i32) {
    %c0_i32 = arith.constant 0 : i32
    %c0_i32_0 = arith.constant 0 : i32
    %c0_i32_1 = arith.constant 0 : i32
    return %c0_i32, %c0_i32_0 : i32, i32
  }
  func.func @transform_8(%arg0: i32) -> (i32, i32) {
    %c0_i32 = arith.constant 0 : i32
    %c0_i32_0 = arith.constant 0 : i32
    %c0_i32_1 = arith.constant 0 : i32
    return %c0_i32, %c0_i32_0 : i32, i32
  }
}

</mosaic_0001>

<bundles_post_ra>
// kernel: tpu_custom_call.1
= control target key start
LH: loop header
LB: loop body
LE: loop exit
PB: predicated region body
PF: predicated region fallthrough
CT: control target
= control target key end

     0   :  { %14 = vsyncpa [#allocation3], 0  ;;  %s1300_s0 = inlined_call_operand.hbm [shape: f32[32,64], index: 0, kind: input, shape index: {}]   ;;  %s1301_s1 = inlined_call_operand.hbm [shape: f32[32,64], index: 1, kind: input, shape index: {}]   ;;  %s1302_s2 = inlined_call_operand.hbm [shape: f32[64,128], index: 2, kind: input, shape index: {}]   ;;  %s1303_s3 = inlined_call_operand.vmem [shape: f32[1,128], index: 3, kind: input, shape index: {}]   ;;  %s1304_s4 = inlined_call_operand.vmem [shape: f32[1,128], index: 4, kind: input, shape index: {}]   ;;  %s1305_s5 = inlined_call_operand.vmem [shape: f32[1,128], index: 5, kind: input, shape index: {}]   ;;  %s1306_s6 = inlined_call_operand.hbm [shape: f32[16,16], index: 6, kind: input, shape index: {}]   ;;  %s1307_s7 = inlined_call_operand.hbm [shape: f32[32,64], index: 7, kind: output, shape index: {0}]   ;;  %s1308_s8 = inlined_call_operand.vmem [shape: f32[32,16], index: 8, kind: output, shape index: {1}]  }
   0x1   :  { %15 = vsyncpa [#allocation6], 0 }
   0x2   :  { %16 = vsyncpa [#allocation9], 0 }
   0x3   :  { %17 = vsyncpa [#allocation4], 0  ;;  %s1095_s27 = smov [#allocation5]   ;;  %s1096_s29 = smov [#allocation2]  }
   0x4   :  { %s35_s28 = sshll.u32 %s1095_s27, 4  ;;  %s23_s30 = sshll.u32 %s1096_s29, 4  ;;  %s36_s28 = int_to_ptr.vmem [resolvable:$true] %s35_s28  ;;  %s24_s30 = int_to_ptr.vmem [resolvable:$true] %s23_s30 }
   0x5   :  { %s995_s9 = scalar_lea.vmem %s36_s28, 512  ;;  %p1000_p1 = scmp.lt.s32.totalorder %s36_s28, %s36_s28 }
   0x6   :  { %p996_p0 = scmp.ne.s32.totalorder %s36_s28, %s995_s9  ;;  %p1001_p2 = scmp.lt.s32.totalorder %s995_s9, %s995_s9 }
   0x8   :  { %p1002_p3 = por %p1001_p2, %p1000_p1 }
   0xa   :  { %p1003_p4 = pnand %p1002_p3, %p996_p0 }
   0xc   :  { %1006 = shalt.err (!%p1003_p4)
}
   0xd   :  { %s1097_s10 = smov 128   ;;  %s1098_s11 = smov 8  }
   0xe   :  { %41 = dma.hbm_to_vmem [thread:$0]  %s1301_s1, 512, %s36_s28, [#allocation6], %s1097_s10, %s1097_s10, %s1098_s11  }
   0xf   :  { %s1015_s14 = scalar_lea.vmem %s24_s30, 512  ;;  %p1020_p6 = scmp.lt.s32.totalorder %s24_s30, %s24_s30 }
  0x10   :  { %p1016_p5 = scmp.ne.s32.totalorder %s24_s30, %s1015_s14  ;;  %p1021_p7 = scmp.lt.s32.totalorder %s1015_s14, %s1015_s14 }
  0x12   :  { %p1022_p8 = por %p1021_p7, %p1020_p6 }
  0x14   :  { %p1023_p9 = pnand %p1022_p8, %p1016_p5 }
  0x16   :  { %1026 = shalt.err (!%p1023_p9)
}
  0x17   :  { %29 = dma.hbm_to_vmem [thread:$0]  %s1300_s0, 512, %s24_s30, [#allocation3], %s1097_s10, %s1097_s10, %s1098_s11  }
  0x18   :  { %s1099_s17 = smov [#allocation7]   ;;  %s1100_s19 = smov [#allocation8]  }
  0x19   :  { %s47_s18 = sshll.u32 %s1099_s17, 4  ;;  %s65_s20 = sshll.u32 %s1100_s19, 4  ;;  %s48_s18 = int_to_ptr.vmem [resolvable:$true] %s47_s18  ;;  %s66_s20 = int_to_ptr.vmem [resolvable:$true] %s65_s20 }
  0x1a   :  { %s1035_s1 = scalar_lea.vmem %s48_s18, 1024  ;;  %p1040_p11 = scmp.lt.s32.totalorder %s48_s18, %s48_s18 }
  0x1b   :  { %p1036_p10 = scmp.ne.s32.totalorder %s48_s18, %s1035_s1  ;;  %p1041_p12 = scmp.lt.s32.totalorder %s1035_s1, %s1035_s1 }
  0x1d   :  { %p1042_p13 = por %p1041_p12, %p1040_p11 }
  0x1f   :  { %p1043_p0 = pnand %p1042_p13, %p1036_p10 }
  0x21   :  { %1046 = shalt.err (!%p1043_p0)
}
  0x22   :  { %53 = dma.hbm_to_vmem [thread:$0]  %s1302_s2, 1024, %s48_s18, [#allocation6], %s1097_s10, %s1097_s10, %s1098_s11  }
  0x23   :  { %s1055_s0 = scalar_lea.vmem %s66_s20, 256  ;;  %p1060_p2 = scmp.lt.s32.totalorder %s66_s20, %s66_s20 }
  0x24   :  { %p1056_p1 = scmp.ne.s32.totalorder %s66_s20, %s1055_s0  ;;  %p1061_p3 = scmp.lt.s32.totalorder %s1055_s0, %s1055_s0 }
  0x26   :  { %p1062_p4 = por %p1061_p3, %p1060_p2 }
  0x28   :  { %p1063_p5 = pnand %p1062_p4, %p1056_p1 }
  0x2a   :  { %1066 = shalt.err (!%p1063_p5)
}
  0x2b   :  { %71 = dma.hbm_to_vmem [thread:$0]  %s1306_s6, 256, %s66_s20, [#allocation9], %s1097_s10, %s1097_s10, %s1098_s11  }
  0x2c   :  { %1087 = dma.done.wait [#allocation3], 512  }
  0x2d   :  { %1088 = vsyncadd [#allocation3], 4294966784 }
  0x2e   :  { %1089 = dma.done.wait [#allocation6], 1536  }
  0x2f   :  { %1090 = vsyncadd [#allocation6], 4294965760 }
  0x30   :  { %1091 = dma.done.wait [#allocation9], 256  }
  0x31   :  { %1092 = vsyncadd [#allocation9], 4294967040  ;;  %v91_v0 = vld [vmem:[#allocation7 + $0x38] sm:$0xff]  ;;  %v90_v1 = vld [vmem:[#allocation7 + $0x30] sm:$0xff]  ;;  %vm105_vm0 = vcmask 523264   ;;  %vm508_vm9 = vcmask 130048  }
  0x32   :  { %888 = vmatprep.subr.mxu0 %v91_v0  ;;  %910 = vmatprep.subr.mxu1 %v91_v0  ;;  %v89_v2 = vld [vmem:[#allocation7 + $0x28] sm:$0xff]  ;;  %v88_v3 = vld [vmem:[#allocation7 + $0x20] sm:$0xff]  ;;  %v87_v4 = vld [vmem:[#allocation7 + $0x18] sm:$0xff] }
  0x33   :  { %889 = vmatpush3.msra.mxu0 %v91_v0  ;;  %911 = vmatpush3.msra.mxu1 %v91_v0  ;;  %v86_v5 = vld [vmem:[#allocation7 + $0x10] sm:$0xff]  ;;  %v85_v6 = vld [vmem:[#allocation7 + $0x8] sm:$0xff]  ;;  %v84_v7 = vld [vmem:[#allocation7] sm:$0xff] }
  0x34   :  { %890 = vmatprep.subr.mxu0 %v90_v1  ;;  %912 = vmatprep.subr.mxu1 %v90_v1  ;;  %v1171_v8 = vld [vmem:[#allocation2] sm:$0xff]  ;;  %v1173_v10 = vld [vmem:[#allocation2 + $0x8] sm:$0xff]  ;;  %v1177_v12 = vld [vmem:[#allocation2 + $0x10] sm:$0xff] }
  0x35   :  { %891 = vmatpush3.msra.mxu0 %v90_v1  ;;  %913 = vmatpush3.msra.mxu1 %v90_v1  ;;  %v273_v9 = vld [vmem:[#allocation5] sm:$0xff]  ;;  %v274_v11 = vld [vmem:[#allocation5 + $0x8] sm:$0xff]  ;;  %v1179_v13 = vld [vmem:[#allocation5 + $0x10] sm:$0xff] }
  0x36   :  { %892 = vmatprep.subr.mxu0 %v89_v2  ;;  %914 = vmatprep.subr.mxu1 %v89_v2  ;;  %v1189_v14 = vld [vmem:[#allocation2 + $0x18] sm:$0xff]  ;;  %v833_v16 = vld [vmem:[%s1303_s3] ss:$0 sm:$0xff] }
  0x37   :  { %893 = vmatpush3.msra.mxu0 %v89_v2  ;;  %915 = vmatpush3.msra.mxu1 %v89_v2  ;;  %v1191_v15 = vld [vmem:[#allocation5 + $0x18] sm:$0xff] }
  0x38   :  { %894 = vmatprep.subr.mxu0 %v88_v3  ;;  %916 = vmatprep.subr.mxu1 %v88_v3 }
  0x39   :  { %895 = vmatpush3.msra.mxu0 %v88_v3  ;;  %917 = vmatpush3.msra.mxu1 %v88_v3 }
  0x3a   :  { %896 = vmatprep.subr.mxu0 %v87_v4  ;;  %918 = vmatprep.subr.mxu1 %v87_v4 }
  0x3b   :  { %897 = vmatpush3.msra.mxu0 %v87_v4  ;;  %919 = vmatpush3.msra.mxu1 %v87_v4 }
  0x3c   :  { %898 = vmatprep.subr.mxu0 %v86_v5  ;;  %920 = vmatprep.subr.mxu1 %v86_v5 }
  0x3d   :  { %899 = vmatpush3.msra.mxu0 %v86_v5  ;;  %921 = vmatpush3.msra.mxu1 %v86_v5 }
  0x3e   :  { %900 = vmatprep.subr.mxu0 %v85_v6  ;;  %922 = vmatprep.subr.mxu1 %v85_v6 }
  0x3f   :  { %901 = vmatpush3.msra.mxu0 %v85_v6  ;;  %923 = vmatpush3.msra.mxu1 %v85_v6 }
  0x40   :  { %902 = vmatprep.subr.mxu0 %v84_v7  ;;  %924 = vmatprep.subr.mxu1 %v84_v7 }
  0x41   :  { %903 = vmatpush3.msra.mxu0 %v84_v7  ;;  %904 = vmatprep.mubr.msk.f32.mxu0 %vm105_vm0, %v1171_v8 }
  0x42   :  { %925 = vmatpush3.msra.mxu1 %v84_v7  ;;  %926 = vmatprep.mubr.msk.f32.mxu1 %vm105_vm0, %v273_v9 }
  0x43   :  { %905 = vmatmul.mubr.msk.f32.vlgmr.msra.gmra.mxu0 %vm105_vm0, %v1173_v10  ;;  %927 = vmatmul.mubr.msk.f32.vlgmr.msra.gmra.mxu1 %vm105_vm0, %v274_v11 }
  0x44   :  { %907 = vmatprep.mubr.msk.f32.mxu0 %vm105_vm0, %v1177_v12  ;;  %929 = vmatprep.mubr.msk.f32.mxu1 %vm105_vm0, %v1179_v13 }
  0x45   :  { %939 = vmatprep.subr.mxu1 %v274_v11 }
  0x46   :  { %940 = vmatpush3.msra.mxu1 %v274_v11 }
  0x47   :  { %908 = vmatmul.mubr.msk.f32.gmra.mxu0 %vm105_vm0, %v1189_v14  ;;  %930 = vmatmul.mubr.msk.f32.gmra.mxu1 %vm105_vm0, %v1191_v15 }
  0x48   :  { %941 = vmatprep.subr.mxu1 %v273_v9 }
  0x49   :  { %942 = vmatpush3.msra.mxu1 %v273_v9 }
  0x4a   :  { %953 = vmatprep.subr.mxu1 %v1191_v15 }
 0x103   :  { %v906_v17 = vpop.f32.mrf.mxu0  ;;  %v928_v18 = vpop.f32.mrf.mxu1 }
 0x104   :  { %v1201_v19 = vadd.f32 %v906_v17, %v833_v16  ;;  %v1203_v20 = vadd.f32 %v928_v18, %v833_v16 }
 0x105   :  { %v184_v21 = vpop.f32.mrf.mxu0  ;;  %v355_v22 = vpop.f32.mrf.mxu1 }
 0x106   :  { %v215_v23 = vmul.f32 %v1201_v19, %v1201_v19  ;;  %v1207_v24 = vadd.f32 %v833_v16, %v184_v21  ;;  %v1209_v25 = vadd.f32 %v833_v16, %v355_v22  ;;  %v385_v31 = vmul.f32 %v1203_v20, %v1203_v20 }
 0x107   :  { %v909_v26 = vpop.f32.mrf.mxu0  ;;  %v931_v27 = vpop.f32.mrf.mxu1 }
 0x108   :  { %v203_v28 = vadd.f32 %v1201_v19, %v1207_v24  ;;  %v214_v29 = vmul.f32 %v1207_v24, %v1207_v24  ;;  %v384_v30 = vmul.f32 %v1209_v25, %v1209_v25  ;;  %v1219_v32 = vadd.f32 %v909_v26, %v833_v16 }
 0x109   :  { %v1221_v33 = vadd.f32 %v931_v27, %v833_v16  ;;  %v194_v34 = vpop.f32.mrf.mxu0  ;;  %v365_v35 = vpop.f32.mrf.mxu1  ;;  %v374_v37 = vadd.f32 %v1203_v20, %v1209_v25 }
 0x10a   :  { %v218_v36 = vadd.f32 %v215_v23, %v214_v29  ;;  %v1225_v38 = vadd.f32 %v833_v16, %v194_v34  ;;  %v1227_v39 = vadd.f32 %v833_v16, %v365_v35  ;;  %v388_v40 = vadd.f32 %v385_v31, %v384_v30 }
 0x10b   :  { %v217_v41 = vmul.f32 %v1219_v32, %v1219_v32  ;;  %v387_v46 = vmul.f32 %v1221_v33, %v1221_v33 }
 0x10c   :  { %v204_v42 = vadd.f32 %v203_v28, %v1225_v38  ;;  %v216_v43 = vmul.f32 %v1225_v38, %v1225_v38  ;;  %v375_v44 = vadd.f32 %v374_v37, %v1227_v39  ;;  %v386_v45 = vmul.f32 %v1227_v39, %v1227_v39 }
 0x10e   :  { %v205_v47 = vadd.f32 %v204_v42, %v1219_v32  ;;  %v219_v48 = vadd.f32 %v218_v36, %v216_v43  ;;  %v376_v49 = vadd.f32 %v375_v44, %v1221_v33  ;;  %v389_v50 = vadd.f32 %v388_v40, %v386_v45 }
 0x110   :  { %v206_v51 = vrot.slane %v205_v47, 4  ;;  %v220_v52 = vadd.f32 %v219_v48, %v217_v41  ;;  %v377_v53 = vrot.slane %v376_v49, 4  ;;  %v390_v54 = vadd.f32 %v389_v50, %v387_v46  ;;  %v838_v41 = vld [vmem:[%s1304_s4] ss:$0 sm:$0xff] }
 0x112   :  { %v207_v55 = vadd.f32 %v206_v51, %v205_v47  ;;  %v221_v56 = vrot.slane %v220_v52, 4  ;;  %v378_v57 = vadd.f32 %v377_v53, %v376_v49  ;;  %v391_v58 = vrot.slane %v390_v54, 4 }
 0x114   :  { %v208_v59 = vrot.slane %v207_v55, 2  ;;  %v222_v60 = vadd.f32 %v221_v56, %v220_v52  ;;  %v379_v61 = vrot.slane %v378_v57, 2  ;;  %v392_v62 = vadd.f32 %v391_v58, %v390_v54 }
 0x116   :  { %v209_v63 = vadd.f32 %v208_v59, %v207_v55  ;;  %v223_v0 = vrot.slane %v222_v60, 2  ;;  %v380_v1 = vadd.f32 %v379_v61, %v378_v57  ;;  %v393_v2 = vrot.slane %v392_v62, 2 }
 0x118   :  { %v210_v3 = vrot.slane %v209_v63, 1  ;;  %v224_v4 = vadd.f32 %v223_v0, %v222_v60  ;;  %v381_v5 = vrot.slane %v380_v1, 1  ;;  %v394_v6 = vadd.f32 %v393_v2, %v392_v62 }
 0x11a   :  { %v211_v7 = vadd.f32 %v210_v3, %v209_v63  ;;  %v225_v9 = vrot.slane %v224_v4, 1  ;;  %v382_v11 = vadd.f32 %v381_v5, %v380_v1  ;;  %v395_v16 = vrot.slane %v394_v6, 1 }
 0x11c   :  { %v213_v17 = vmul.f32 0.03125, %v211_v7  ;;  %v226_v18 = vadd.f32 %v225_v9, %v224_v4  ;;  %v383_v21 = vmul.f32 0.03125, %v382_v11  ;;  %v396_v22 = vadd.f32 %v395_v16, %v394_v6 }
 0x11e   :  { %v227_v23 = vmul.f32 0.03125, %v226_v18  ;;  %v228_v26 = vmul.f32 %v213_v17, %v213_v17  ;;  %v397_v27 = vmul.f32 0.03125, %v396_v22  ;;  %v398_v28 = vmul.f32 %v383_v21, %v383_v21 }
 0x11f   :  { %v231_v37 = vsub.f32 %v1207_v24, %v213_v17  ;;  %v402_v42 = vsub.f32 %v1203_v20, %v383_v21  ;;  %v401_v43 = vsub.f32 %v1209_v25, %v383_v21  ;;  %v404_v44 = vsub.f32 %v1221_v33, %v383_v21  ;;  %v839_v24 = vld [vmem:[%s1305_s5] ss:$0 sm:$0xff] }
 0x120   :  { %v229_v29 = vsub.f32 %v227_v23, %v228_v26  ;;  %v399_v30 = vsub.f32 %v397_v27, %v398_v28  ;;  %v232_v45 = vsub.f32 %v1201_v19, %v213_v17  ;;  %v233_v47 = vsub.f32 %v1225_v38, %v213_v17 }
 0x121   :  { %v403_v48 = vsub.f32 %v1227_v39, %v383_v21  ;;  %v234_v39 = vsub.f32 %v1219_v32, %v213_v17 }
 0x122   :  { %v230_v31 = vmax.f32 %v229_v29, 0.0  ;;  %v400_v34 = vmax.f32 %v399_v30, 0.0  ;;  %v431_v30 = vld [vmem:[#allocation8] sm:$0xff] }
 0x124   :  { %v235_v35 = vadd.f32 1e-05, %v230_v31  ;;  %v405_v36 = vadd.f32 1e-05, %v400_v34  ;;  %v432_v31 = vld [vmem:[#allocation8 + $0x8] sm:$0xff] }
 0x126   :  { %967 = vrsqrt.f32 %v235_v35 }
 0x127   :  { %969 = vrsqrt.f32 %v405_v36 }
 0x133   :  { %v968_v40 = vpop.eup %967 }
 0x134   :  { %v970_v46 = vpop.eup %969  ;;  %v237_v49 = vmul.f32 %v968_v40, %v231_v37  ;;  %v238_v20 = vmul.f32 %v968_v40, %v232_v45  ;;  %v239_v53 = vmul.f32 %v968_v40, %v233_v47  ;;  %v240_v4 = vmul.f32 %v968_v40, %v234_v39 }
 0x135   :  { %v408_v50 = vmul.f32 %v970_v46, %v402_v42  ;;  %v407_v51 = vmul.f32 %v970_v46, %v401_v43  ;;  %v410_v52 = vmul.f32 %v970_v46, %v404_v44  ;;  %v409_v25 = vmul.f32 %v970_v46, %v403_v48 }
 0x136   :  { %v247_v54 = vmul.f32 %v838_v41, %v237_v49  ;;  %v248_v58 = vmul.f32 %v838_v41, %v238_v20  ;;  %v249_v60 = vmul.f32 %v838_v41, %v239_v53  ;;  %v250_v11 = vmul.f32 %v838_v41, %v240_v4 }
 0x137   :  { %v412_v33 = vmul.f32 %v838_v41, %v408_v50  ;;  %v411_v55 = vmul.f32 %v838_v41, %v407_v51  ;;  %v414_v19 = vmul.f32 %v838_v41, %v410_v52  ;;  %v413_v61 = vmul.f32 %v838_v41, %v409_v25 }
 0x138   :  { %v257_v56 = vadd.f32 %v839_v24, %v247_v54  ;;  %v258_v3 = vadd.f32 %v839_v24, %v248_v58  ;;  %v259_v5 = vadd.f32 %v839_v24, %v249_v60  ;;  %v260_v22 = vadd.f32 %v839_v24, %v250_v11 }
 0x139   :  { %v416_v57 = vadd.f32 %v839_v24, %v412_v33  ;;  %v415_v38 = vadd.f32 %v839_v24, %v411_v55  ;;  %v418_v0 = vadd.f32 %v839_v24, %v414_v19  ;;  %v417_v32 = vadd.f32 %v839_v24, %v413_v61 }
 0x13a   :  { %vm261_vm1 = vcmp.ge.f32.partialorder %v257_v56, 0.0  ;;  %v265_v59 = vmul.f32 0.1, %v257_v56  ;;  %v266_v9 = vmul.f32 0.1, %v258_v3  ;;  %vm262_vm5 = vcmp.ge.f32.partialorder %v258_v3, 0.0 }
 0x13b   :  { %vm420_vm2 = vcmp.ge.f32.partialorder %v416_v57, 0.0  ;;  %v424_v62 = vmul.f32 0.1, %v416_v57  ;;  %v423_v63 = vmul.f32 0.1, %v415_v38  ;;  %vm419_vm3 = vcmp.ge.f32.partialorder %v415_v38, 0.0 }
 0x13c   :  { %v269_v1 = vsel %vm261_vm1, %v257_v56, %v265_v59  ;;  %v426_v7 = vmul.f32 0.1, %v418_v0  ;;  %vm422_vm4 = vcmp.ge.f32.partialorder %v418_v0, 0.0  ;;  %v267_v16 = vmul.f32 0.1, %v259_v5 }
 0x13d   :  { %v428_v2 = vsel %vm420_vm2, %v416_v57, %v424_v62  ;;  %936 = vmatprep.mubr.f32.mxu0 %v269_v1  ;;  %v427_v6 = vsel %vm419_vm3, %v415_v38, %v423_v63  ;;  %vm263_vm6 = vcmp.ge.f32.partialorder %v259_v5, 0.0  ;;  %v425_v18 = vmul.f32 0.1, %v417_v32 }
 0x13e   :  { %932 = vmatprep.subr.mxu0 %v428_v2  ;;  %v430_v17 = vsel %vm422_vm4, %v418_v0, %v426_v7  ;;  %vm421_vm7 = vcmp.ge.f32.partialorder %v417_v32, 0.0  ;;  %v270_v21 = vsel %vm262_vm5, %v258_v3, %v266_v9  ;;  %v271_v23 = vsel %vm263_vm6, %v259_v5, %v267_v16 }
 0x13f   :  { %933 = vmatpush3.xpose.msra.mxu0 %v428_v2  ;;  %v429_v26 = vsel %vm421_vm7, %v417_v32, %v425_v18  ;;  %v268_v27 = vmul.f32 0.1, %v260_v22  ;;  %vm264_vm8 = vcmp.ge.f32.partialorder %v260_v22, 0.0 }
 0x140   :  { %934 = vmatprep.subr.mxu0 %v427_v6 }
 0x141   :  { %v272_v28 = vsel %vm264_vm8, %v260_v22, %v268_v27 }
 0x143   :  { %935 = vmatpush3.xpose.msra.mxu0 %v427_v6 }
 0x144   :  { %946 = vmatprep.subr.mxu0 %v430_v17 }
 0x146   :  { %937 = vmatmul.mubr.f32.vlgmr.msra.gmra.mxu0 %v270_v21  ;;  %v803_v21 = vmul.f32 0.5, %v1189_v14 }
 0x147   :  { %947 = vmatpush3.xpose.msra.mxu0 %v430_v17  ;;  %950 = vmatprep.mubr.f32.mxu0 %v271_v23 }
 0x148   :  { %948 = vmatprep.subr.mxu0 %v429_v26 }
 0x14b   :  { %949 = vmatpush3.xpose.msra.mxu0 %v429_v26  ;;  %v802_v26 = vmul.f32 0.5, %v1177_v12 }
 0x14e   :  { %951 = vmatmul.mubr.f32.vlgmr.msra.gmra.mxu0 %v272_v28 }
 0x206   :  { %v938_v29 = vpop.f32.mrf.mxu0 }
 0x207   :  { %v505_v36 = vadd.f32 %v938_v29, %v432_v31 }
 0x208   :  { %v499_v34 = vpop.f32.mrf.mxu0 }
 0x209   :  { %v500_v35 = vadd.f32 %v499_v34, %v431_v30  ;;  %v512_v41 = vsel %vm508_vm9, %v505_v36, -inf }
 0x20b   :  { %v509_v37 = vsel %vm508_vm9, %v500_v35, -inf }
 0x20c   :  { %510 = vmax.xlane.f32.xlu0 %v509_v37 }
 0x20e   :  { %v952_v40 = vpop.f32.mrf.mxu0 }
 0x20f   :  { %v694_v44 = vadd.f32 %v952_v40, %v432_v31 }
 0x210   :  { %v688_v42 = vpop.f32.mrf.mxu0  ;;  %513 = vmax.xlane.f32.xlu0 %v512_v41 }
 0x211   :  { %v689_v43 = vadd.f32 %v688_v42, %v431_v30  ;;  %v700_v46 = vsel %vm508_vm9, %v694_v44, -inf }
 0x213   :  { %v697_v45 = vsel %vm508_vm9, %v689_v43, -inf }
 0x214   :  { %698 = vmax.xlane.f32.xlu1 %v697_v45 }
 0x218   :  { %701 = vmax.xlane.f32.xlu1 %v700_v46 }
 0x295   :  { %v511_v47 = vpop.xlane.xlu0 %510 }
 0x296   :  { %v515_v48 = vsub.f32 %v500_v35, %v511_v47 }
 0x298   :  { %v517_v49 = vmul.f32 1.442695, %v515_v48 }
 0x299   :  { %v514_v24 = vpop.xlane.xlu0 %513 }
 0x29a   :  { %971 = vpow2.f32 %v517_v49  ;;  %v516_v50 = vsub.f32 %v505_v36, %v514_v24 }
 0x29c   :  { %v519_v51 = vmul.f32 1.442695, %v516_v50 }
 0x29d   :  { %v699_v52 = vpop.xlane.xlu1 %698 }
 0x29e   :  { %973 = vpow2.f32 %v519_v51  ;;  %v703_v20 = vsub.f32 %v689_v43, %v699_v52 }
 0x2a0   :  { %v705_v53 = vmul.f32 1.442695, %v703_v20 }
 0x2a1   :  { %v702_v25 = vpop.xlane.xlu1 %701 }
 0x2a2   :  { %975 = vpow2.f32 %v705_v53  ;;  %v704_v54 = vsub.f32 %v694_v44, %v702_v25 }
 0x2a4   :  { %v707_v33 = vmul.f32 1.442695, %v704_v54 }
 0x2a6   :  { %977 = vpow2.f32 %v707_v33 }
 0x2a7   :  { %v972_v55 = vpop.eup %971 }
 0x2a8   :  { %v521_v19 = vsel %vm508_vm9, %v972_v55, 0.0 }
 0x2a9   :  { %522 = vadd.xlane.f32.xlu0 %v521_v19 }
 0x2ab   :  { %v974_v56 = vpop.eup %973 }
 0x2ac   :  { %v524_v57 = vsel %vm508_vm9, %v974_v56, 0.0 }
 0x2ad   :  { %525 = vadd.xlane.f32.xlu1 %v524_v57 }
 0x2af   :  { %v976_v38 = vpop.eup %975 }
 0x2b0   :  { %v709_v58 = vsel %vm508_vm9, %v976_v38, 0.0 }
 0x2b1   :  { %710 = vadd.xlane.f32.xlu0 %v709_v58 }
 0x2b3   :  { %v978_v39 = vpop.eup %977 }
 0x2b4   :  { %v712_v59 = vsel %vm508_vm9, %v978_v39, 0.0 }
 0x2b5   :  { %713 = vadd.xlane.f32.xlu1 %v712_v59 }
 0x332   :  { %v523_v60 = vpop.xlane.xlu0 %522 }
 0x333   :  { %979 = vrcp.f32 %v523_v60 }
 0x336   :  { %v526_v61 = vpop.xlane.xlu1 %525 }
 0x337   :  { %981 = vrcp.f32 %v526_v61 }
 0x33a   :  { %v711_v62 = vpop.xlane.xlu0 %710 }
 0x33b   :  { %983 = vrcp.f32 %v711_v62 }
 0x33e   :  { %v714_v63 = vpop.xlane.xlu1 %713 }
 0x33f   :  { %985 = vrcp.f32 %v714_v63 }
 0x340   :  { %v980_v0 = vpop.eup %979 }
 0x341   :  { %v528_v1 = vmul.f32 %v980_v0, %v972_v55 }
 0x343   :  { %531 = vst.msk [vmem:[%s1308_s8] sm:$0xff] %vm508_vm9, %v528_v1  ;;  %943 = vmatprep.mubr.msk.f32.mxu1 %vm508_vm9, %v528_v1 }
 0x344   :  { %v982_v2 = vpop.eup %981 }
 0x345   :  { %v530_v3 = vmul.f32 %v982_v2, %v974_v56 }
 0x347   :  { %532 = vst.msk [vmem:[%s1308_s8 + $0x8] sm:$0xff] %vm508_vm9, %v530_v3  ;;  %944 = vmatmul.mubr.msk.f32.vlgmr.msra.gmra.mxu1 %vm508_vm9, %v530_v3 }
 0x348   :  { %v984_v4 = vpop.eup %983  ;;  %954 = vmatpush3.msra.mxu1 %v1191_v15  ;;  %v615_v15 = vmul.f32 0.5, %v1173_v10 }
 0x349   :  { %v716_v5 = vmul.f32 %v984_v4, %v976_v38  ;;  %955 = vmatprep.subr.mxu1 %v1179_v13 }
 0x34a   :  { %956 = vmatpush3.msra.mxu1 %v1179_v13  ;;  %v614_v13 = vmul.f32 0.5, %v1171_v8 }
 0x34b   :  { %719 = vst.msk [vmem:[%s1308_s8 + $0x10] sm:$0xff] %vm508_vm9, %v716_v5  ;;  %957 = vmatprep.mubr.msk.f32.mxu1 %vm508_vm9, %v716_v5 }
 0x34c   :  { %v986_v6 = vpop.eup %985 }
 0x34d   :  { %v718_v7 = vmul.f32 %v986_v6, %v978_v39 }
 0x34f   :  { %720 = vst.msk [vmem:[%s1308_s8 + $0x18] sm:$0xff] %vm508_vm9, %v718_v7  ;;  %958 = vmatmul.mubr.msk.f32.vlgmr.msra.gmra.mxu1 %vm508_vm9, %v718_v7  ;;  %s1101_s8 = smov [#allocation10]  }
 0x350   :  { %s815_s14 = sshll.u32 %s1101_s8, 4  ;;  %s816_s14 = int_to_ptr.vmem [resolvable:$true] %s815_s14 }
 0x351   :  { %s1067_s15 = scalar_lea.vmem %s816_s14, 512  ;;  %p1072_p7 = scmp.lt.s32.totalorder %s816_s14, %s816_s14 }
 0x352   :  { %p1068_p6 = scmp.ne.s32.totalorder %s816_s14, %s1067_s15  ;;  %p1073_p8 = scmp.lt.s32.totalorder %s1067_s15, %s1067_s15 }
 0x354   :  { %p1074_p9 = por %p1073_p8, %p1072_p7 }
 0x356   :  { %p1075_p10 = pnand %p1074_p9, %p1068_p6 }
 0x407   :  { %v945_v32 = vpop.f32.mrf.mxu1 }
 0x408   :  { %v617_v9 = vmul.f32 0.5, %v945_v32 }
 0x409   :  { %v605_v11 = vpop.f32.mrf.mxu1 }
 0x40a   :  { %v619_v16 = vadd.f32 %v617_v9, %v615_v15  ;;  %v616_v17 = vmul.f32 0.5, %v605_v11 }
 0x40c   :  { %621 = vst.msk [vmem:[#allocation10 + $0x8] sm:$0xff] %vm105_vm0, %v619_v16  ;;  %v618_v18 = vadd.f32 %v616_v17, %v614_v13 }
 0x40e   :  { %620 = vst.msk [vmem:[#allocation10] sm:$0xff] %vm105_vm0, %v618_v18 }
 0x40f   :  { %v959_v22 = vpop.f32.mrf.mxu1 }
 0x410   :  { %v805_v23 = vmul.f32 0.5, %v959_v22 }
 0x411   :  { %v793_v27 = vpop.f32.mrf.mxu1 }
 0x412   :  { %v807_v10 = vadd.f32 %v805_v23, %v803_v21  ;;  %v804_v8 = vmul.f32 0.5, %v793_v27 }
 0x414   :  { %809 = vst.msk [vmem:[#allocation10 + $0x18] sm:$0xff] %vm105_vm0, %v807_v10  ;;  %v806_v28 = vadd.f32 %v804_v8, %v802_v26 }
 0x416   :  { %808 = vst.msk [vmem:[#allocation10 + $0x10] sm:$0xff] %vm105_vm0, %v806_v28 }
 0x417   :  { %1078 = shalt.err (!%p1075_p10)
}
 0x418   :  { %821 = dma.vmem_to_hbm [thread:$0]  %s816_s14, 512, %s1307_s7, [#allocation4], %s1097_s10, %s1097_s10, %s1098_s11  }
 0x419   :  { %1093 = dma.done.wait [#allocation4], 512  }
 0x41a   :  { %1094 = vsyncadd [#allocation4], 4294966784 }
 0x41b   :  { %829 = vsyncpa [#allocation3], 1 }
 0x41c   :  { %830 = vsyncpa [#allocation6], 1 }
 0x41d   :  { %831 = vsyncpa [#allocation9], 1 }
 0x41e   :  { %832 = vsyncpa [#allocation4], 1 }

</bundles_post_ra>
